<compile_context>
chip_gen: v7x
topology: tpu7x:2x2x1
jax: 0.10.0
libtpu: 0.0.40
codegen_flags: <defaults>
</compile_context>

<pallas_src>
import functools

import jax
import jax.numpy as jnp
from jax.experimental import pallas as pl
from jax.experimental.pallas import tpu as pltpu


def _round_up(x, m):
    return ((x + m - 1) // m) * m


def _is_small_nonneg_int(g):
    return float(g) == float(int(g)) and 0 <= int(g) <= 16


def _int_pow(x, n):
    """x**n for a small positive python int n via repeated squaring (VPU only)."""
    assert n >= 1
    result = None
    base = x
    while n:
        if n & 1:
            result = base if result is None else result * base
        n >>= 1
        if n:
            base = base * base
    return result


def _asl_single_label_kernel(inputs_ref, target_ref, out_ref, *,
                             gamma_pos, gamma_neg, eps, batch, tile_b,
                             steps_per_part, has_tail):
    p_idx = pl.program_id(0)   # parallel batch partition (megacore-shardable)
    i_idx = pl.program_id(1)   # sequential tile within the partition

    @pl.when(i_idx == 0)
    def _():
        out_ref[...] = jnp.zeros_like(out_ref)

    x = inputs_ref[...].astype(jnp.float32)            # (TB, C)
    tb, num_classes = x.shape

    # --- numerically stable log_softmax(dim=-1); keep exp(z) live for reuse ---
    m = jnp.max(x, axis=-1, keepdims=True)             # (TB, 1)
    z = x - m
    s = jnp.exp(z)                                     # the only full-tile exp
    denom = jnp.sum(s, axis=-1, keepdims=True)         # (TB, 1)
    lp = z - jnp.log(denom)                            # log_preds, <= 0

    # --- per-row gather of the target column (no f32 one-hot tile) ---
    tgt = target_ref[...]                              # (TB, 1) int32
    col = jax.lax.broadcasted_iota(jnp.int32, (tb, num_classes), 1)
    is_tgt = col == tgt                                # (TB, C) bool
    lp_t = jnp.sum(jnp.where(is_tgt, lp, 0.0), axis=-1, keepdims=True)  # (TB, 1)

    need_pt = (gamma_pos != 0.0) or (eps > 0.0 and gamma_neg != 0.0
                                     and _is_small_nonneg_int(gamma_neg))
    p_t = jnp.exp(lp_t) if need_pt else None           # (TB, 1), cheap

    # --- positive (target-column) focusing term, (TB, 1) only ---
    if gamma_pos == 0.0:
        pos_t = lp_t                                    # w_pos == 1 (matches pow(x, 0))
    else:
        base = 1.0 - p_t
        if _is_small_nonneg_int(gamma_pos):
            w_pos = _int_pow(base, int(gamma_pos))
        else:
            w_pos = jnp.power(base, gamma_pos)          # constant exponent, (TB, 1)
        pos_t = w_pos * lp_t

    # --- row loss with label smoothing folded algebraically ---
    if eps > 0.0:
        # negative-branch weighted log-preds over the whole tile
        if gamma_neg == 0.0:
            wlp_neg = lp                                # w_neg == 1
            neg_t = lp_t
        elif _is_small_nonneg_int(gamma_neg):
            prob = s * (1.0 / denom)                    # softmax, reuses exp(z)
            wlp_neg = _int_pow(prob, int(gamma_neg)) * lp
            neg_t = _int_pow(p_t, int(gamma_neg)) * lp_t
        else:
            wlp_neg = jnp.exp(gamma_neg * lp) * lp
            neg_t = jnp.exp(gamma_neg * lp_t) * lp_t
        sum_wlp = jnp.sum(wlp_neg, axis=-1, keepdims=True)      # (TB, 1)
        eps_c = eps / num_classes
        row_loss = -(eps_c * (sum_wlp - neg_t + pos_t) + (1.0 - eps) * pos_t)
    else:
        row_loss = -pos_t                               # (TB, 1)

    # --- mask padded rows (traced only when padding exists) ---
    if has_tail:
        row_start = (p_idx * steps_per_part + i_idx) * tile_b
        row_idx = row_start + jax.lax.broadcasted_iota(jnp.int32, (tb, 1), 0)
        row_loss = jnp.where(row_idx < batch, row_loss, 0.0)

    out_ref[...] += jnp.sum(row_loss, axis=0, keepdims=True).reshape(1, 1, 1)


def _vmem_budgets():
    """(per-pipeline-buffer byte budget, scoped vmem limit) by chip generation."""
    vmem_bytes = 64 * 1024 * 1024             # conservative default (v7x physical)
    try:
        vmem_bytes = int(getattr(pltpu.get_tpu_info(), "vmem_capacity_bytes",
                                 vmem_bytes))
    except Exception:
        pass
    if vmem_bytes >= 100 * 1024 * 1024:       # v5e / v6e: 128 MiB physical VMEM
        return 8 * 1024 * 1024, 64 * 1024 * 1024
    return 4 * 1024 * 1024, 32 * 1024 * 1024  # v7x: 64 MiB physical VMEM


def asl_single_label_loss(inputs, target, gamma_pos=0.0, gamma_neg=4.0,
                          eps=0.1, tile_b=None, num_partitions=2):
    """JAX wrapper reproducing ASLSingleLabel.forward with reduction='mean'."""
    B, C = inputs.shape
    itemsize = jnp.dtype(inputs.dtype).itemsize
    sublane = {4: 8, 2: 16, 1: 32}.get(itemsize, 8)

    per_buf_budget, vmem_limit = _vmem_budgets()

    if tile_b is None:
        # Largest batch tile whose per-pipeline-buffer logits fit the budget.
        tile_b = 1024
        while tile_b > sublane and tile_b * C * itemsize > per_buf_budget:
            tile_b //= 2
    tile_b = _round_up(max(sublane, min(int(tile_b), B)), sublane)

    num_tiles = pl.cdiv(B, tile_b)
    parts = max(1, min(int(num_partitions), num_tiles))   # 2 feeds both v7x TCs
    steps = pl.cdiv(num_tiles, parts)
    b_pad = parts * steps * tile_b
    if b_pad != B:
        inputs = jnp.pad(inputs, ((0, b_pad - B), (0, 0)))
        target = jnp.pad(target, ((0, b_pad - B),))
    target_2d = target.astype(jnp.int32).reshape(b_pad, 1)

    kernel = functools.partial(
        _asl_single_label_kernel,
        gamma_pos=float(gamma_pos),
        gamma_neg=float(gamma_neg),
        eps=float(eps),
        batch=B,
        tile_b=tile_b,
        steps_per_part=steps,
        has_tail=(b_pad != B),
    )

    transcendentals = b_pad * C + 4 * b_pad               # 1 exp/elem + per-row ops
    if gamma_neg != 0.0 and not _is_small_nonneg_int(gamma_neg) and eps > 0.0:
        transcendentals += b_pad * C                       # full-tile exp fallback
    cost = pl.CostEstimate(
        flops=14 * b_pad * C,
        transcendentals=transcendentals,
        bytes_accessed=b_pad * C * itemsize + b_pad * 4 + parts * 4,
    )

    partials = pl.pallas_call(
        kernel,
        out_shape=jax.ShapeDtypeStruct((parts, 1, 1), jnp.float32),
        grid_spec=pltpu.PrefetchScalarGridSpec(
            num_scalar_prefetch=0,
            grid=(parts, steps),
            in_specs=[
                pl.BlockSpec((tile_b, C), lambda p, i: (p * steps + i, 0)),  # logits
                pl.BlockSpec((tile_b, 1), lambda p, i: (p * steps + i, 0)),  # targets
            ],
            out_specs=pl.BlockSpec((1, 1, 1), lambda p, i: (p, 0, 0)),       # partials
        ),
        compiler_params=pltpu.CompilerParams(
            dimension_semantics=("parallel", "arbitrary"),
            vmem_limit_bytes=vmem_limit,
        ),
        cost_estimate=cost,
    )(inputs, target_2d)
    return jnp.sum(partials) / jnp.float32(B)


def _asl_reference(inputs, target, gamma_pos=0.0, gamma_neg=4.0, eps=0.1):
    """Pure-JAX reference mirroring the PyTorch forward, for verification."""
    _, C = inputs.shape
    log_preds = jax.nn.log_softmax(inputs.astype(jnp.float32), axis=-1)
    targets = jax.nn.one_hot(target, C, dtype=jnp.float32)
    anti_targets = 1.0 - targets
    xs_pos = jnp.exp(log_preds) * targets
    xs_neg = (1.0 - jnp.exp(log_preds)) * anti_targets
    asymmetric_w = jnp.power(1.0 - xs_pos - xs_neg,
                             gamma_pos * targets + gamma_neg * anti_targets)
    log_preds = log_preds * asymmetric_w
    if eps > 0:
        targets_classes = targets * (1.0 - eps) + eps / C
    else:
        targets_classes = targets
    loss = -(targets_classes * log_preds)
    return jnp.mean(jnp.sum(loss, axis=-1))


if __name__ == "__main__":
    key = jax.random.PRNGKey(0)
    k1, k2, k3, k4, k5, k6, k7, k8 = jax.random.split(key, 8)

    # Case 1: defaults (gamma_pos=0, gamma_neg=4, eps=0.1), tile-aligned batch.
    inputs = jax.random.normal(k1, (8, 16), dtype=jnp.float32)
    target = jax.random.randint(k2, (8,), 0, 16, dtype=jnp.int32)
    loss = jax.block_until_ready(asl_single_label_loss(inputs, target))
    ref = _asl_reference(inputs, target)
    assert jnp.allclose(loss, ref, atol=1e-5, rtol=1e-5), (loss, ref)

    # Case 2: batch not a tile multiple -> padding + tail mask; integer gamma_pos.
    inputs2 = jax.random.normal(k3, (10, 16), dtype=jnp.float32)
    target2 = jax.random.randint(k4, (10,), 0, 16, dtype=jnp.int32)
    loss2 = jax.block_until_ready(
        asl_single_label_loss(inputs2, target2, gamma_pos=1.0, gamma_neg=4.0))
    ref2 = _asl_reference(inputs2, target2, gamma_pos=1.0, gamma_neg=4.0)
    assert jnp.allclose(loss2, ref2, atol=1e-5, rtol=1e-5), (loss2, ref2)

    # Case 3: bf16 logits, multi-tile batch -> exercises the parallel partition
    # axis (grid=(2, 2)), per-partition partials, sublane-16 rounding, padding.
    inputs3 = jax.random.normal(k5, (48, 128), dtype=jnp.bfloat16)
    target3 = jax.random.randint(k6, (48,), 0, 128, dtype=jnp.int32)
    loss3 = jax.block_until_ready(
        asl_single_label_loss(inputs3, target3, gamma_pos=2.0, gamma_neg=4.0,
                              eps=0.1, tile_b=16, num_partitions=2))
    ref3 = _asl_reference(inputs3, target3, gamma_pos=2.0, gamma_neg=4.0, eps=0.1)
    assert jnp.allclose(loss3, ref3, atol=2e-5, rtol=2e-5), (loss3, ref3)

    # Case 4: non-integer gammas (exp / pow fallbacks) and eps == 0.
    inputs4 = jax.random.normal(k7, (8, 16), dtype=jnp.float32)
    target4 = jax.random.randint(k8, (8,), 0, 16, dtype=jnp.int32)
    loss4 = jax.block_until_ready(
        asl_single_label_loss(inputs4, target4, gamma_pos=0.5, gamma_neg=3.5,
                              eps=0.0))
    ref4 = _asl_reference(inputs4, target4, gamma_pos=0.5, gamma_neg=3.5, eps=0.0)
    assert jnp.allclose(loss4, ref4, atol=1e-5, rtol=1e-5), (loss4, ref4)

    print("KERNEL_OK")
</pallas_src>

<mosaic_0001>
module attributes {stable_mosaic.version = 11 : i64} {
  func.func @_asl_single_label_kernel(%arg0: i32, %arg1: i32, %arg2: memref<8x16xf32, #tpu.memory_space<vmem>>, %arg3: memref<8x1xi32, #tpu.memory_space<vmem>>, %arg4: memref<1x1x1xf32, #tpu.memory_space<vmem>>) attributes {dimension_semantics = [#tpu.dimension_semantics<parallel>, #tpu.dimension_semantics<arbitrary>], iteration_bounds = array<i64: 1, 1>, scalar_prefetch = 0 : i64, scratch_operands = 0 : i64, tpu.core_type = #tpu.core_type<tc>, window_params = [{transform_indices = @transform_0, window_bounds = array<i64: 8, 16>}, {transform_indices = @transform_1, window_bounds = array<i64: 8, 1>}, {transform_indices = @transform_2, window_bounds = array<i64: 1, 1, 1>}]} {
    %c0_i32 = arith.constant 0 : i32
    %0 = arith.cmpi eq, %arg1, %c0_i32 : i32
    %1 = arith.extui %0 : i1 to i32
    %c0_i32_0 = arith.constant 0 : i32
    %2 = arith.cmpi ne, %1, %c0_i32_0 : i32
    scf.if %2 {
      %cst_19 = arith.constant 0.000000e+00 : f32
      %50 = vector.broadcast %cst_19 : f32 to vector<1x1x1xf32>
      %c0_20 = arith.constant 0 : index
      %c0_21 = arith.constant 0 : index
      %c0_22 = arith.constant 0 : index
      %51 = vector.load %arg4[%c0_20, %c0_21, %c0_22] : memref<1x1x1xf32, #tpu.memory_space<vmem>>, vector<1x1x1xf32>
      tpu.vector_store %arg4[%c0_20, %c0_21, %c0_22], %50 {strides = array<i32>} : memref<1x1x1xf32, #tpu.memory_space<vmem>>, vector<1x1x1xf32>,
    } else {
    }
    %c0 = arith.constant 0 : index
    %c0_1 = arith.constant 0 : index
    %3 = vector.load %arg2[%c0, %c0_1] : memref<8x16xf32, #tpu.memory_space<vmem>>, vector<8x16xf32>
    %cst = arith.constant dense<0xFF800000> : vector<8xf32>
    %4 = vector.multi_reduction <maximumf>, %3, %cst [1] : vector<8x16xf32> to vector<8xf32>
    %5 = vector.shape_cast %4 : vector<8xf32> to vector<8x1xf32>
    %6 = vector.broadcast %5 : vector<8x1xf32> to vector<8x16xf32>
    %7 = arith.subf %3, %6 : vector<8x16xf32>
    %8 = math.exp %7 : vector<8x16xf32>
    %cst_2 = arith.constant dense<0.000000e+00> : vector<8xf32>
    %9 = vector.multi_reduction <add>, %8, %cst_2 [1] : vector<8x16xf32> to vector<8xf32>
    %10 = vector.shape_cast %9 : vector<8xf32> to vector<8x1xf32>
    %11 = math.log %10 : vector<8x1xf32>
    %12 = vector.broadcast %11 : vector<8x1xf32> to vector<8x16xf32>
    %13 = arith.subf %7, %12 : vector<8x16xf32>
    %c0_3 = arith.constant 0 : index
    %c0_4 = arith.constant 0 : index
    %14 = vector.load %arg3[%c0_3, %c0_4] : memref<8x1xi32, #tpu.memory_space<vmem>>, vector<8x1xi32>
    %15 = tpu.iota {dimensions = array<i32: 1>} : vector<8x16xi32>
    %16 = vector.broadcast %14 : vector<8x1xi32> to vector<8x16xi32>
    %17 = arith.cmpi eq, %15, %16 : vector<8x16xi32>
    %cst_5 = arith.constant 0.000000e+00 : f32
    %18 = vector.broadcast %cst_5 : f32 to vector<8x16xf32>
    %19 = arith.select %17, %13, %18 : vector<8x16xi1>, vector<8x16xf32>
    %cst_6 = arith.constant dense<0.000000e+00> : vector<8xf32>
    %20 = vector.multi_reduction <add>, %19, %cst_6 [1] : vector<8x16xf32> to vector<8xf32>
    %21 = vector.shape_cast %20 : vector<8xf32> to vector<8x1xf32>
    %22 = math.exp %21 : vector<8x1xf32>
    %cst_7 = arith.constant 1.000000e+00 : f32
    %23 = vector.broadcast %cst_7 : f32 to vector<8x1xf32>
    %24 = arith.divf %23, %10 : vector<8x1xf32>
    %25 = vector.broadcast %24 : vector<8x1xf32> to vector<8x16xf32>
    %26 = arith.mulf %8, %25 : vector<8x16xf32>
    %27 = arith.mulf %26, %26 : vector<8x16xf32>
    %28 = arith.mulf %27, %27 : vector<8x16xf32>
    %29 = arith.mulf %28, %13 : vector<8x16xf32>
    %30 = arith.mulf %22, %22 : vector<8x1xf32>
    %31 = arith.mulf %30, %30 : vector<8x1xf32>
    %32 = arith.mulf %31, %21 : vector<8x1xf32>
    %cst_8 = arith.constant dense<0.000000e+00> : vector<8xf32>
    %33 = vector.multi_reduction <add>, %29, %cst_8 [1] : vector<8x16xf32> to vector<8xf32>
    %34 = vector.shape_cast %33 : vector<8xf32> to vector<8x1xf32>
    %35 = arith.subf %34, %32 : vector<8x1xf32>
    %36 = arith.addf %35, %21 : vector<8x1xf32>
    %cst_9 = arith.constant 6.250000e-03 : f32
    %37 = vector.broadcast %cst_9 : f32 to vector<8x1xf32>
    %38 = arith.mulf %37, %36 : vector<8x1xf32>
    %cst_10 = arith.constant 0.899999976 : f32
    %39 = vector.broadcast %cst_10 : f32 to vector<8x1xf32>
    %40 = arith.mulf %39, %21 : vector<8x1xf32>
    %41 = arith.addf %38, %40 : vector<8x1xf32>
    %cst_11 = arith.constant 0.000000e+00 : f32
    %42 = vector.broadcast %cst_11 : f32 to vector<8x1xf32>
    %43 = arith.subf %42, %41 : vector<8x1xf32>
    %c0_12 = arith.constant 0 : index
    %c0_13 = arith.constant 0 : index
    %c0_14 = arith.constant 0 : index
    %44 = vector.load %arg4[%c0_12, %c0_13, %c0_14] : memref<1x1x1xf32, #tpu.memory_space<vmem>>, vector<1x1x1xf32>
    %cst_15 = arith.constant dense<0.000000e+00> : vector<1xf32>
    %45 = vector.multi_reduction <add>, %43, %cst_15 [0] : vector<8x1xf32> to vector<1xf32>
    %46 = vector.shape_cast %45 : vector<1xf32> to vector<1x1xf32>
    %47 = vector.shape_cast %46 : vector<1x1xf32> to vector<1x1x1xf32>
    %48 = arith.addf %44, %47 : vector<1x1x1xf32>
    %c0_16 = arith.constant 0 : index
    %c0_17 = arith.constant 0 : index
    %c0_18 = arith.constant 0 : index
    %49 = vector.load %arg4[%c0_16, %c0_17, %c0_18] : memref<1x1x1xf32, #tpu.memory_space<vmem>>, vector<1x1x1xf32>
    tpu.vector_store %arg4[%c0_16, %c0_17, %c0_18], %48 {strides = array<i32>} : memref<1x1x1xf32, #tpu.memory_space<vmem>>, vector<1x1x1xf32>,
    return
  }
  func.func @transform_0(%arg0: i32, %arg1: i32) -> (i32, i32) {
    %c1_i32 = arith.constant 1 : i32
    %0 = arith.muli %arg0, %c1_i32 : i32
    %1 = arith.addi %0, %arg1 : i32
    %c0_i32 = arith.constant 0 : i32
    %c0_i32_0 = arith.constant 0 : i32
    return %1, %c0_i32 : i32, i32
  }
  func.func @transform_1(%arg0: i32, %arg1: i32) -> (i32, i32) {
    %c1_i32 = arith.constant 1 : i32
    %0 = arith.muli %arg0, %c1_i32 : i32
    %1 = arith.addi %0, %arg1 : i32
    %c0_i32 = arith.constant 0 : i32
    %c0_i32_0 = arith.constant 0 : i32
    return %1, %c0_i32 : i32, i32
  }
  func.func @transform_2(%arg0: i32, %arg1: i32) -> (i32, i32, i32) {
    %c0_i32 = arith.constant 0 : i32
    %c0_i32_0 = arith.constant 0 : i32
    %c0_i32_1 = arith.constant 0 : i32
    return %arg0, %c0_i32, %c0_i32_0 : i32, i32, i32
  }
}

</mosaic_0001>

<bundles_post_ra>
// kernel: tpu_custom_call.1
= control target key start
LH: loop header
LB: loop body
LE: loop exit
PB: predicated region body
PF: predicated region fallthrough
CT: control target
= control target key end

     0   :  { %vm53_vm0 = vcmask 130048   ;;  %s212_s0 = inlined_call_operand.vmem [shape: f32[8,16], index: 0, kind: input, shape index: {}]   ;;  %s213_s1 = inlined_call_operand.vmem [shape: s32[8,1], index: 1, kind: input, shape index: {}]   ;;  %s214_s2 = inlined_call_operand.hbm [shape: f32[1,1,1], index: 2, kind: output, shape index: {}]  }
   0x1   :  { %v52_v0 = vld [vmem:[%s212_s0] sm:$0xff] }
   0x2   :  { %7 = vsyncpa [#allocation3], 0  ;;  %v54_v1 = vsel %vm53_vm0, %v52_v0, -inf  ;;  %v66_v2 = vld [vmem:[%s213_s1] sm:$0xff]  ;;  %v170_v3 = vmov 0   ;;  %v67_v10 = vlaneseq  ;;  %vm50_vm2 = vcmask 0  }
   0x3   :  { %55 = vmax.xlane.f32.xlu0 %v54_v1  ;;  %136 = vset.pattern.permute.xlu1 %v170_v3  ;;  %v171_v24 = vmov 0.0   ;;  %s172_s0 = smov [#allocation2]  }
   0x4   :  { %137 = vset.pattern.permute.xlu0 %v170_v3  ;;  %70 = vperm.xlu1 %136, %v66_v2   ;;  %v68_v11 = vand.u32 127, %v67_v10  ;;  %51 = vst.msk [vmem:[#allocation2] sm:$0x1] %vm50_vm2, %v171_v24  ;;  %s113_s1 = sshll.u32 %s172_s0, 4  ;;  %s114_s1 = int_to_ptr.vmem [resolvable:$true] %s113_s1 }
   0x5   :  { %s146_s13 = scalar_lea.vmem %s114_s1, 16  ;;  %s150_s14 = scalar_lea.vmem %s114_s1, 32 }
   0x6   :  { %p147_p0 = scmp.ne.s32.totalorder %s114_s1, %s146_s13  ;;  %p151_p1 = scmp.lt.s32.totalorder %s114_s1, %s114_s1 }
   0x7   :  { %p152_p2 = scmp.lt.s32.totalorder %s150_s14, %s146_s13 }
   0x9   :  { %p153_p3 = por %p152_p2, %p151_p1 }
   0xb   :  { %v97_v43 = vld [vmem:[#allocation2] sm:$0x1]  ;;  %p154_p4 = pnand %p153_p3, %p147_p0 }
  0x83   :  { %v71_v12 = vpop.permute.xlu1 %70 }
  0x84   :  { %vm72_vm1 = vcmp.eq.s32.totalorder %v68_v11, %v71_v12 }
  0x90   :  { %v56_v4 = vpop.xlane.xlu0 %55 }
  0x91   :  { %v57_v5 = vsub.f32 %v52_v0, %v56_v4 }
  0x93   :  { %v58_v6 = vmul.f32 1.442695, %v57_v5 }
  0x95   :  { %138 = vpow2.f32 %v58_v6 }
  0x9f   :  { %v139_v7 = vpop.eup %138 }
  0xa0   :  { %v60_v8 = vsel %vm53_vm0, %v139_v7, 0.0 }
  0xa1   :  { %61 = vadd.xlane.f32.xlu0 %v60_v8 }
 0x12e   :  { %v62_v9 = vpop.xlane.xlu0 %61 }
 0x12f   :  { %140 = vlog2.f32 %v62_v9 }
 0x130   :  { %142 = vrcp.f32 %v62_v9 }
 0x139   :  { %v141_v13 = vpop.eup %140 }
 0x13a   :  { %v143_v14 = vpop.eup %142  ;;  %v64_v15 = vmul.f32 0.6931472, %v141_v13 }
 0x13b   :  { %v81_v16 = vmul.f32 %v143_v14, %v139_v7 }
 0x13c   :  { %v65_v17 = vsub.f32 %v57_v5, %v64_v15 }
 0x13d   :  { %v82_v18 = vmul.f32 %v81_v16, %v81_v16 }
 0x13e   :  { %v73_v19 = vsel %vm72_vm1, %v65_v17, 0.0 }
 0x13f   :  { %v74_v20 = vsel %vm53_vm0, %v73_v19, 0.0  ;;  %v83_v21 = vmul.f32 %v82_v18, %v82_v18 }
 0x140   :  { %75 = vadd.xlane.f32.xlu1 %v74_v20 }
 0x141   :  { %v84_v22 = vmul.f32 %v83_v21, %v65_v17 }
 0x143   :  { %v88_v23 = vsel %vm53_vm0, %v84_v22, 0.0 }
 0x144   :  { %89 = vadd.xlane.f32.xlu0 %v88_v23 }
 0x1cd   :  { %v76_v25 = vpop.xlane.xlu1 %75 }
 0x1ce   :  { %v77_v26 = vmul.f32 1.442695, %v76_v25  ;;  %v94_v34 = vmul.f32 0.9, %v76_v25 }
 0x1d0   :  { %144 = vpow2.f32 %v77_v26 }
 0x1d1   :  { %v90_v31 = vpop.xlane.xlu0 %89 }
 0x1da   :  { %v145_v27 = vpop.eup %144 }
 0x1db   :  { %v85_v28 = vmul.f32 %v145_v27, %v145_v27 }
 0x1dd   :  { %v86_v29 = vmul.f32 %v85_v28, %v85_v28 }
 0x1df   :  { %v87_v30 = vmul.f32 %v86_v29, %v76_v25 }
 0x1e1   :  { %v91_v32 = vsub.f32 %v90_v31, %v87_v30 }
 0x1e3   :  { %v92_v33 = vadd.f32 %v91_v32, %v76_v25 }
 0x1e5   :  { %v93_v35 = vmul.f32 0.00625, %v92_v33 }
 0x1e7   :  { %v95_v36 = vadd.f32 %v94_v34, %v93_v35 }
 0x1e9   :  { %v96_v37 = vsub.f32 0.0, %v95_v36 }
 0x1eb   :  { %v98_v38 = vrot.slane %v96_v37, 4 }
 0x1ed   :  { %v99_v39 = vadd.f32 %v98_v38, %v96_v37 }
 0x1ef   :  { %v100_v40 = vrot.slane %v99_v39, 2 }
 0x1f1   :  { %v101_v41 = vadd.f32 %v100_v40, %v99_v39 }
 0x1f3   :  { %v102_v42 = vrot.slane %v101_v41, 1 }
 0x1f5   :  { %v103_v44 = vadd.f32 %v102_v42, %v101_v41 }
 0x1f7   :  { %v104_v45 = vadd.f32 %v103_v44, %v97_v43 }
 0x1f9   :  { %106 = vst.msk [vmem:[#allocation2] sm:$0x1] %vm50_vm2, %v104_v45 }
 0x1fa   :  { %157 = shalt.err (!%p154_p4)
}
 0x1fb   :  { %s158_s17 = scalar_lea.hbm %s214_s2, 16 }
 0x1fc   :  { %p159_p5 = scmp.ne.s32.totalorder %s214_s2, %s158_s17  ;;  %p162_p6 = scmp.lt.u32.totalorder %s158_s17, %s214_s2 }
 0x1fe   :  { %p164_p7 = pnand %p162_p6, %p159_p5 }
 0x200   :  { %167 = shalt.err (!%p164_p7)
}
 0x201   :  { %116 = dma.vmem_to_hbm [thread:$0]  %s114_s1, 16, %s214_s2, [#allocation3]  }
 0x202   :  { %168 = dma.done.wait [#allocation3], 16  }
 0x203   :  { %169 = vsyncadd [#allocation3], 4294967280 }
 0x204   :  { %120 = vsyncpa [#allocation3], 1 }

</bundles_post_ra>
